<compile_context>
chip_gen: v5e
topology: v5e:2x2
jax: 0.10.0
libtpu: 0.0.40
codegen_flags: <defaults>
</compile_context>

<pallas_src>
import functools
import math

import jax
import jax.numpy as jnp
from jax.experimental import pallas as pl
from jax.experimental.pallas import tpu as pltpu


# ---------------------------------------------------------------------------
# Kernel 1: fused Q/K/V projection (one pass over x, all heads packed).
# ---------------------------------------------------------------------------
def _qkv_proj_kernel(x_ref, wq_ref, bq_ref, wk_ref, bk_ref, wv_ref, bv_ref,
                     q_ref, k_ref, v_ref, *, compute_dtype):
    x = x_ref[...].astype(compute_dtype)

    def proj(w_ref, b_ref):
        return (jnp.dot(x, w_ref[...].astype(compute_dtype),
                        preferred_element_type=jnp.float32) + b_ref[...])

    q_ref[...] = proj(wq_ref, bq_ref).astype(q_ref.dtype)   # 1/sqrt(D) pre-folded
    k_ref[...] = proj(wk_ref, bk_ref).astype(k_ref.dtype)
    v_ref[...] = proj(wv_ref, bv_ref).astype(v_ref.dtype)


# ---------------------------------------------------------------------------
# Kernel 2: attention + output projection.
#   grid = (query tiles ["parallel"], key/value tiles ["arbitrary"])
# ---------------------------------------------------------------------------
def _attention_kernel(q_ref, k_ref, v_ref, wo_ref, bo_ref, out_ref, acc_ref, *,
                      batch, num_heads, head_dim, compute_dtype, approx_recip):
    B, H, D = batch, num_heads, head_dim
    E = H * D
    TQ = q_ref.shape[1]
    TKV = k_ref.shape[1]
    j = pl.program_id(1)

    @pl.when(j == 0)
    def _init():
        acc_ref[...] = jnp.zeros_like(acc_ref)

    q = q_ref[...].astype(compute_dtype)          # (B*H, TQ, D), scale folded in
    k = k_ref[...].astype(compute_dtype)          # (B*H, TKV, D)
    v = v_ref[...].astype(compute_dtype)          # (B*H, TKV, D)

    # Scores for ALL heads in one batched contraction.
    scores = jnp.einsum('zqd,zkd->zqk', q, k,
                        preferred_element_type=jnp.float32)   # (B*H, TQ, TKV) f32

    # Softmax over the BATCH axis (PyTorch F.softmax deprecated default dim=0
    # on a 3-D tensor).  Regrouping leading dims (B*H, TQ) -> (B, H*TQ) keeps
    # the lane dim untouched; normalisation is per (h, q, k) over b and never
    # spans the key axis, so each kv tile's contribution is exact.
    s3 = scores.reshape(B, H * TQ, TKV)
    m = jnp.max(s3, axis=0, keepdims=True)
    e = jnp.exp(s3 - m)
    denom = jnp.sum(e, axis=0, keepdims=True)
    w = (e * pl.reciprocal(denom, approx=approx_recip)).reshape(B * H, TQ, TKV)

    # Accumulate this kv tile's context for all heads into the f32 scratch.
    acc_ref[...] += jnp.einsum('zqk,zkd->zqd', w.astype(compute_dtype), v,
                               preferred_element_type=jnp.float32)

    # Last kv step: re-pack heads into lanes and apply the output projection as
    # ONE full-K (B*TQ, E) @ (E, E) matmul; single store of the output block.
    @pl.when(j == pl.num_programs(1) - 1)
    def _finalize():
        ctx = acc_ref[...].reshape(B, H, TQ, D)
        rows = jnp.concatenate(
            [ctx[:, h].reshape(B * TQ, D) for h in range(H)], axis=-1)
        out = jnp.dot(rows.astype(compute_dtype),
                      wo_ref[...].astype(compute_dtype),
                      preferred_element_type=jnp.float32) + bo_ref[...]
        out_ref[...] = out.reshape(B, TQ, E).astype(out_ref.dtype)


# ---------------------------------------------------------------------------
# Tiling helpers.
# ---------------------------------------------------------------------------
def _pick_seq_tile(s, max_tile):
    """Largest multiple-of-8 divisor of `s` that is <= max_tile (fallback: s)."""
    if s % 8 != 0:
        return s                       # full-extent block is always legal
    best = None
    cand = 8
    limit = max(8, min(s, int(max_tile)))
    while cand <= limit:
        if s % cand == 0:
            best = cand
        cand += 8
    return best if best is not None else s


def _choose_attention_tiles(B, S, H, D, qkv_bytes, query_tile=None, kv_tile=None,
                            vmem_budget_bytes=48 * 1024 * 1024):
    """Generation/VMEM-aware tile picker.

    Budgets against v7x's 64 MiB physical VMEM (v5e/v6e have 128 MiB so the
    same choice is safe there), and prefers >= 2 query tiles so the 'parallel'
    grid axis can feed both v7x TensorCores.
    """
    E, Z = H * D, B * H
    if query_tile is None:
        tq_cap = S // 2 if S >= 16 else S          # keep the parallel grid >= 2
        query_tile = _pick_seq_tile(S, min(512, tq_cap))
    resident = ((E * E + E) * 4                    # wo + bo (f32, constant blocks)
                + 2 * Z * query_tile * D * qkv_bytes   # q block (double buffered)
                + 2 * B * query_tile * E * 4           # out block (double buffered)
                + Z * query_tile * D * 4)              # f32 context accumulator
    per_kv_row = 2 * 2 * Z * D * qkv_bytes         # k + v blocks (double buffered)
    if kv_tile is None:
        headroom = max(vmem_budget_bytes - resident, 8 * per_kv_row)
        kv_tile = _pick_seq_tile(S, min(S, headroom // per_kv_row, 2048))
    vmem_estimate = resident + per_kv_row * kv_tile
    return query_tile, kv_tile, vmem_estimate


# ---------------------------------------------------------------------------
# Wrapper implementing the full module forward pass.
# ---------------------------------------------------------------------------
def multi_head_attention(x, wq, bq, wk, bk, wv, bv, wo, bo, *,
                         compute_dtype=jnp.float32,
                         query_tile=None, kv_tile=None):
    """Pallas forward pass of the PyTorch MultiHeadAttention module.

    x: (B, S, E); wq/wk/wv: (H, E, D); bq/bk/bv: (H, 1, D); wo: (E, E); bo: (1, E).
    Per-head weights follow the y = x @ W + b convention.
    compute_dtype: jnp.float32 (bit-faithful) or jnp.bfloat16 (MXU-friendly;
    f32 accumulation, f32 softmax).
    """
    B, S, E = x.shape
    H, _, D = wq.shape
    assert H * D == E, "embed_dim must be divisible by num_heads"
    N = B * S
    Z = B * H
    scale = 1.0 / math.sqrt(D)
    qkv_dtype = jnp.dtype(compute_dtype)
    qkv_bytes = qkv_dtype.itemsize
    approx_recip = qkv_dtype != jnp.dtype(jnp.float32)

    # Pack per-head projection weights into (E, E)/(1, E) operands; fold the
    # 1/sqrt(D) score scaling into the Q weights + bias (O(S*E) instead of
    # O(S^2) scaling work).
    def pack(w, b):
        return (jnp.transpose(w, (1, 0, 2)).reshape(E, H * D),
                b.reshape(1, H * D))

    wq_p, bq_p = pack(wq, bq)
    wk_p, bk_p = pack(wk, bk)
    wv_p, bv_p = pack(wv, bv)
    wq_p, bq_p = wq_p * scale, bq_p * scale

    # ---- 1) Q/K/V projection (hoisted out of the attention grid) -----------
    x2d = x.reshape(N, E)
    row_tile = _pick_seq_tile(N, 512)
    proj_cost = pl.CostEstimate(
        flops=int(6 * N * E * E),
        transcendentals=0,
        bytes_accessed=int(4 * N * E + 3 * qkv_bytes * N * E + 4 * 3 * (E * E + E)),
    )
    full2d_1 = lambda i: (0, 0)
    q2d, k2d, v2d = pl.pallas_call(
        functools.partial(_qkv_proj_kernel, compute_dtype=compute_dtype),
        out_shape=(jax.ShapeDtypeStruct((N, E), qkv_dtype),) * 3,
        grid=(N // row_tile,),
        in_specs=[
            pl.BlockSpec((row_tile, E), lambda i: (i, 0)),   # x rows
            # Constant-index weight/bias blocks stay resident across the grid.
            # TODO(synk): mark them pipeline_mode=pl.Buffered(1) once verified
            # in the MLIR so Mosaic does not reserve a second (unused) buffer.
            pl.BlockSpec((E, E), full2d_1), pl.BlockSpec((1, E), full2d_1),
            pl.BlockSpec((E, E), full2d_1), pl.BlockSpec((1, E), full2d_1),
            pl.BlockSpec((E, E), full2d_1), pl.BlockSpec((1, E), full2d_1),
        ],
        out_specs=(pl.BlockSpec((row_tile, E), lambda i: (i, 0)),) * 3,
        compiler_params=pltpu.CompilerParams(
            dimension_semantics=("parallel",)),
        cost_estimate=proj_cost,
    )(x2d, wq_p, bq_p, wk_p, bk_p, wv_p, bv_p)

    # ---- 2) Layout plumbing (plain XLA): split heads into a leading batch
    #      dim so the attention kernel needs no per-head lane slicing. --------
    def split_heads(y2d):
        return y2d.reshape(B, S, H, D).transpose(0, 2, 1, 3).reshape(Z, S, D)

    q_h, k_h, v_h = split_heads(q2d), split_heads(k2d), split_heads(v2d)

    # ---- 3) Attention + output projection ----------------------------------
    tq, tkv, vmem_estimate = _choose_attention_tiles(
        B, S, H, D, qkv_bytes, query_tile=query_tile, kv_tile=kv_tile)
    assert S % tq == 0 and (tq % 8 == 0 or tq == S), f"bad query tile {tq}"
    assert S % tkv == 0 and (tkv % 8 == 0 or tkv == S), f"bad kv tile {tkv}"
    n_q, n_kv = S // tq, S // tkv

    # Explicit scoped-VMEM limit derived from the residency estimate (v5e's
    # default is only 16 MiB; v6e/v7x default to 32 MiB).
    vmem_limit = int(min(max(2 * vmem_estimate, 32 * 1024 * 1024),
                         96 * 1024 * 1024))

    attn_cost = pl.CostEstimate(
        flops=int(4 * B * S * S * E + 2 * B * S * E * E),
        transcendentals=int(B * H * S * S),
        bytes_accessed=int(qkv_bytes * B * S * E            # Q, streamed once
                           + 2 * qkv_bytes * n_q * B * S * E  # K,V re-streamed / q tile
                           + 4 * (E * E + E)                  # Wo, bo
                           + 4 * B * S * E),                  # output
    )

    kernel = functools.partial(
        _attention_kernel, batch=B, num_heads=H, head_dim=D,
        compute_dtype=compute_dtype, approx_recip=approx_recip)

    full2d_2 = lambda i, j: (0, 0)
    out = pl.pallas_call(
        kernel,
        out_shape=jax.ShapeDtypeStruct((B, S, E), jnp.float32),
        grid=(n_q, n_kv),
        in_specs=[
            pl.BlockSpec((Z, tq, D), lambda i, j: (0, i, 0)),    # Q tile
            pl.BlockSpec((Z, tkv, D), lambda i, j: (0, j, 0)),   # K tile (streamed)
            pl.BlockSpec((Z, tkv, D), lambda i, j: (0, j, 0)),   # V tile (streamed)
            pl.BlockSpec((E, E), full2d_2),                      # Wo (resident)
            pl.BlockSpec((1, E), full2d_2),                      # bo (resident)
        ],
        # Output blocks are lane-dense whenever E % 128 == 0 (production embed
        # dims).  TODO(synk): for small E (demo E=32) flatten the output to
        # (B, S*E) blocks to avoid masked vst.msk partial stores.
        out_specs=pl.BlockSpec((B, tq, E), lambda i, j: (0, i, 0)),
        scratch_shapes=[pltpu.VMEM((Z, tq, D), jnp.float32)],    # context accumulator
        compiler_params=pltpu.CompilerParams(
            dimension_semantics=("parallel", "arbitrary"),
            vmem_limit_bytes=vmem_limit),
        cost_estimate=attn_cost,
    )(q_h, k_h, v_h, wo, bo)
    return out


def multi_head_attention_ref(x, wq, bq, wk, bk, wv, bv, wo, bo):
    """Pure-JAX reference mirroring the PyTorch module (incl. dim=0 softmax)."""
    H, _, D = wq.shape
    outs = []
    for h in range(H):
        q = x @ wq[h] + bq[h, 0]
        k = x @ wk[h] + bk[h, 0]
        v = x @ wv[h] + bv[h, 0]
        scores = jnp.einsum('bqd,bkd->bqk', q, k) / math.sqrt(D)
        w = jax.nn.softmax(scores, axis=0)   # deprecated F.softmax default dim=0
        outs.append(jnp.einsum('bqk,bkd->bqd', w, v))
    cat = jnp.concatenate(outs, axis=-1)
    return cat @ wo + bo


if __name__ == "__main__":
    B, S, E, H = 2, 16, 32, 4
    D = E // H

    key = jax.random.PRNGKey(0)
    keys = jax.random.split(key, 9)
    bound = 1.0 / math.sqrt(E)   # mimic nn.Linear uniform init scale (deterministic)

    x  = jax.random.normal(keys[0], (B, S, E), dtype=jnp.float32)
    wq = jax.random.uniform(keys[1], (H, E, D), jnp.float32, -bound, bound)
    bq = jax.random.uniform(keys[2], (H, 1, D), jnp.float32, -bound, bound)
    wk = jax.random.uniform(keys[3], (H, E, D), jnp.float32, -bound, bound)
    bk = jax.random.uniform(keys[4], (H, 1, D), jnp.float32, -bound, bound)
    wv = jax.random.uniform(keys[5], (H, E, D), jnp.float32, -bound, bound)
    bv = jax.random.uniform(keys[6], (H, 1, D), jnp.float32, -bound, bound)
    wo = jax.random.uniform(keys[7], (E, E),    jnp.float32, -bound, bound)
    bo = jax.random.uniform(keys[8], (1, E),    jnp.float32, -bound, bound)

    ref = multi_head_attention_ref(x, wq, bq, wk, bk, wv, bv, wo, bo)

    # 1) f32, auto-picked (VMEM-aware) tiles — grid (2, 1) at these shapes.
    out = jax.block_until_ready(
        multi_head_attention(x, wq, bq, wk, bk, wv, bv, wo, bo))
    assert out.shape == (B, S, E)
    assert jnp.allclose(out, ref, atol=1e-5, rtol=1e-5), "f32 mismatch vs reference"

    # 2) f32, forced 8x8 tiles — exercises the kv-accumulation axis (grid (2, 2)).
    out_tiled = jax.block_until_ready(
        multi_head_attention(x, wq, bq, wk, bk, wv, bv, wo, bo,
                             query_tile=8, kv_tile=8))
    assert jnp.allclose(out_tiled, ref, atol=1e-5, rtol=1e-5), "tiled f32 mismatch"

    # 3) bf16 MXU path (f32 accumulation + f32 softmax), looser tolerance.
    out_bf16 = jax.block_until_ready(
        multi_head_attention(x, wq, bq, wk, bk, wv, bv, wo, bo,
                             compute_dtype=jnp.bfloat16, query_tile=8, kv_tile=8))
    assert jnp.allclose(out_bf16, ref, atol=5e-2, rtol=5e-2), "bf16 mismatch"

    print("KERNEL_OK")
</pallas_src>

<mosaic_0001>
module attributes {stable_mosaic.version = 11 : i64} {
  func.func @_qkv_proj_kernel(%arg0: i32, %arg1: memref<32x32xf32, #tpu.memory_space<vmem>>, %arg2: memref<32x32xf32, #tpu.memory_space<vmem>>, %arg3: memref<1x32xf32, #tpu.memory_space<vmem>>, %arg4: memref<32x32xf32, #tpu.memory_space<vmem>>, %arg5: memref<1x32xf32, #tpu.memory_space<vmem>>, %arg6: memref<32x32xf32, #tpu.memory_space<vmem>>, %arg7: memref<1x32xf32, #tpu.memory_space<vmem>>, %arg8: memref<32x32xf32, #tpu.memory_space<vmem>>, %arg9: memref<32x32xf32, #tpu.memory_space<vmem>>, %arg10: memref<32x32xf32, #tpu.memory_space<vmem>>) attributes {dimension_semantics = [#tpu.dimension_semantics<parallel>], iteration_bounds = array<i64: 1>, scalar_prefetch = 0 : i64, scratch_operands = 0 : i64, tpu.core_type = #tpu.core_type<tc>, window_params = [{transform_indices = @transform_0, window_bounds = array<i64: 32, 32>}, {pipeline_mode = #tpu.pipeline_mode<synchronous>, transform_indices = @transform_1, window_bounds = array<i64: 32, 32>}, {pipeline_mode = #tpu.pipeline_mode<synchronous>, transform_indices = @transform_2, window_bounds = array<i64: 1, 32>}, {pipeline_mode = #tpu.pipeline_mode<synchronous>, transform_indices = @transform_3, window_bounds = array<i64: 32, 32>}, {pipeline_mode = #tpu.pipeline_mode<synchronous>, transform_indices = @transform_4, window_bounds = array<i64: 1, 32>}, {pipeline_mode = #tpu.pipeline_mode<synchronous>, transform_indices = @transform_5, window_bounds = array<i64: 32, 32>}, {pipeline_mode = #tpu.pipeline_mode<synchronous>, transform_indices = @transform_6, window_bounds = array<i64: 1, 32>}, {transform_indices = @transform_7, window_bounds = array<i64: 32, 32>}, {transform_indices = @transform_8, window_bounds = array<i64: 32, 32>}, {transform_indices = @transform_9, window_bounds = array<i64: 32, 32>}]} {
    %c0 = arith.constant 0 : index
    %c0_0 = arith.constant 0 : index
    %0 = vector.load %arg1[%c0, %c0_0] : memref<32x32xf32, #tpu.memory_space<vmem>>, vector<32x32xf32>
    %c0_1 = arith.constant 0 : index
    %c0_2 = arith.constant 0 : index
    %1 = vector.load %arg2[%c0_1, %c0_2] : memref<32x32xf32, #tpu.memory_space<vmem>>, vector<32x32xf32>
    %cst = arith.constant dense<0.000000e+00> : vector<32x32xf32>
    %2 = tpu.matmul %0, %1, %cst {dimension_numbers = #tpu.dot_dimension_numbers<[1], [0], [0], [1], [0, 0, 1, 1], [], []>} : vector<32x32xf32>, vector<32x32xf32>, vector<32x32xf32> -> vector<32x32xf32>
    %c0_3 = arith.constant 0 : index
    %c0_4 = arith.constant 0 : index
    %3 = vector.load %arg3[%c0_3, %c0_4] : memref<1x32xf32, #tpu.memory_space<vmem>>, vector<1x32xf32>
    %4 = vector.broadcast %3 : vector<1x32xf32> to vector<32x32xf32>
    %5 = arith.addf %2, %4 : vector<32x32xf32>
    %c0_5 = arith.constant 0 : index
    %c0_6 = arith.constant 0 : index
    %6 = vector.load %arg8[%c0_5, %c0_6] : memref<32x32xf32, #tpu.memory_space<vmem>>, vector<32x32xf32>
    tpu.vector_store %arg8[%c0_5, %c0_6], %5 {strides = array<i32>} : memref<32x32xf32, #tpu.memory_space<vmem>>, vector<32x32xf32>,
    %c0_7 = arith.constant 0 : index
    %c0_8 = arith.constant 0 : index
    %7 = vector.load %arg4[%c0_7, %c0_8] : memref<32x32xf32, #tpu.memory_space<vmem>>, vector<32x32xf32>
    %cst_9 = arith.constant dense<0.000000e+00> : vector<32x32xf32>
    %8 = tpu.matmul %0, %7, %cst_9 {dimension_numbers = #tpu.dot_dimension_numbers<[1], [0], [0], [1], [0, 0, 1, 1], [], []>} : vector<32x32xf32>, vector<32x32xf32>, vector<32x32xf32> -> vector<32x32xf32>
    %c0_10 = arith.constant 0 : index
    %c0_11 = arith.constant 0 : index
    %9 = vector.load %arg5[%c0_10, %c0_11] : memref<1x32xf32, #tpu.memory_space<vmem>>, vector<1x32xf32>
    %10 = vector.broadcast %9 : vector<1x32xf32> to vector<32x32xf32>
    %11 = arith.addf %8, %10 : vector<32x32xf32>
    %c0_12 = arith.constant 0 : index
    %c0_13 = arith.constant 0 : index
    %12 = vector.load %arg9[%c0_12, %c0_13] : memref<32x32xf32, #tpu.memory_space<vmem>>, vector<32x32xf32>
    tpu.vector_store %arg9[%c0_12, %c0_13], %11 {strides = array<i32>} : memref<32x32xf32, #tpu.memory_space<vmem>>, vector<32x32xf32>,
    %c0_14 = arith.constant 0 : index
    %c0_15 = arith.constant 0 : index
    %13 = vector.load %arg6[%c0_14, %c0_15] : memref<32x32xf32, #tpu.memory_space<vmem>>, vector<32x32xf32>
    %cst_16 = arith.constant dense<0.000000e+00> : vector<32x32xf32>
    %14 = tpu.matmul %0, %13, %cst_16 {dimension_numbers = #tpu.dot_dimension_numbers<[1], [0], [0], [1], [0, 0, 1, 1], [], []>} : vector<32x32xf32>, vector<32x32xf32>, vector<32x32xf32> -> vector<32x32xf32>
    %c0_17 = arith.constant 0 : index
    %c0_18 = arith.constant 0 : index
    %15 = vector.load %arg7[%c0_17, %c0_18] : memref<1x32xf32, #tpu.memory_space<vmem>>, vector<1x32xf32>
    %16 = vector.broadcast %15 : vector<1x32xf32> to vector<32x32xf32>
    %17 = arith.addf %14, %16 : vector<32x32xf32>
    %c0_19 = arith.constant 0 : index
    %c0_20 = arith.constant 0 : index
    %18 = vector.load %arg10[%c0_19, %c0_20] : memref<32x32xf32, #tpu.memory_space<vmem>>, vector<32x32xf32>
    tpu.vector_store %arg10[%c0_19, %c0_20], %17 {strides = array<i32>} : memref<32x32xf32, #tpu.memory_space<vmem>>, vector<32x32xf32>,
    return
  }
  func.func @transform_0(%arg0: i32) -> (i32, i32) {
    %c0_i32 = arith.constant 0 : i32
    %c0_i32_0 = arith.constant 0 : i32
    return %arg0, %c0_i32 : i32, i32
  }
  func.func @transform_1(%arg0: i32) -> (i32, i32) {
    %c0_i32 = arith.constant 0 : i32
    %c0_i32_0 = arith.constant 0 : i32
    %c0_i32_1 = arith.constant 0 : i32
    return %c0_i32, %c0_i32_0 : i32, i32
  }
  func.func @transform_2(%arg0: i32) -> (i32, i32) {
    %c0_i32 = arith.constant 0 : i32
    %c0_i32_0 = arith.constant 0 : i32
    %c0_i32_1 = arith.constant 0 : i32
    return %c0_i32, %c0_i32_0 : i32, i32
  }
  func.func @transform_3(%arg0: i32) -> (i32, i32) {
    %c0_i32 = arith.constant 0 : i32
    %c0_i32_0 = arith.constant 0 : i32
    %c0_i32_1 = arith.constant 0 : i32
    return %c0_i32, %c0_i32_0 : i32, i32
  }
  func.func @transform_4(%arg0: i32) -> (i32, i32) {
    %c0_i32 = arith.constant 0 : i32
    %c0_i32_0 = arith.constant 0 : i32
    %c0_i32_1 = arith.constant 0 : i32
    return %c0_i32, %c0_i32_0 : i32, i32
  }
  func.func @transform_5(%arg0: i32) -> (i32, i32) {
    %c0_i32 = arith.constant 0 : i32
    %c0_i32_0 = arith.constant 0 : i32
    %c0_i32_1 = arith.constant 0 : i32
    return %c0_i32, %c0_i32_0 : i32, i32
  }
  func.func @transform_6(%arg0: i32) -> (i32, i32) {
    %c0_i32 = arith.constant 0 : i32
    %c0_i32_0 = arith.constant 0 : i32
    %c0_i32_1 = arith.constant 0 : i32
    return %c0_i32, %c0_i32_0 : i32, i32
  }
  func.func @transform_7(%arg0: i32) -> (i32, i32) {
    %c0_i32 = arith.constant 0 : i32
    %c0_i32_0 = arith.constant 0 : i32
    return %arg0, %c0_i32 : i32, i32
  }
  func.func @transform_8(%arg0: i32) -> (i32, i32) {
    %c0_i32 = arith.constant 0 : i32
    %c0_i32_0 = arith.constant 0 : i32
    return %arg0, %c0_i32 : i32, i32
  }
  func.func @transform_9(%arg0: i32) -> (i32, i32) {
    %c0_i32 = arith.constant 0 : i32
    %c0_i32_0 = arith.constant 0 : i32
    return %arg0, %c0_i32 : i32, i32
  }
}

</mosaic_0001>

<bundles_post_ra>
// kernel: tpu_custom_call.1
= control target key start
LH: loop header
LB: loop body
LE: loop exit
PB: predicated region body
PF: predicated region fallthrough
CT: control target
= control target key end

     0   :  { %15 = vsyncpa [#allocation3], 0  ;;  %s638_s0 = inlined_call_operand.hbm [shape: f32[32,32], index: 0, kind: input, shape index: {}]   ;;  %s639_s1 = inlined_call_operand.hbm [shape: f32[32,32], index: 1, kind: input, shape index: {}]   ;;  %s640_s2 = inlined_call_operand.vmem [shape: f32[1,32], index: 2, kind: input, shape index: {}]   ;;  %s641_s3 = inlined_call_operand.hbm [shape: f32[32,32], index: 3, kind: input, shape index: {}]   ;;  %s642_s4 = inlined_call_operand.vmem [shape: f32[1,32], index: 4, kind: input, shape index: {}]   ;;  %s643_s5 = inlined_call_operand.hbm [shape: f32[32,32], index: 5, kind: input, shape index: {}]   ;;  %s644_s6 = inlined_call_operand.vmem [shape: f32[1,32], index: 6, kind: input, shape index: {}]   ;;  %s645_s7 = inlined_call_operand.hbm [shape: f32[32,32], index: 7, kind: output, shape index: {0}]   ;;  %s646_s8 = inlined_call_operand.hbm [shape: f32[32,32], index: 8, kind: output, shape index: {1}]   ;;  %s647_s9 = inlined_call_operand.hbm [shape: f32[32,32], index: 9, kind: output, shape index: {2}]  }
   0x1   :  { %16 = vsyncpa [#allocation6], 0 }
   0x2   :  { %17 = vsyncpa [#allocation9], 0 }
   0x3   :  { %18 = vsyncpa [#allocation4], 0 }
   0x4   :  { %19 = vsyncpa [#allocation12], 0  ;;  %s37_s11 = sshll.u32 %s639_s1, 4  ;;  %s504_s12 = smov [#allocation5]   ;;  %s38_s11 = int_to_ptr.hbm [resolvable:$true] %s37_s11 }
   0x5   :  { %s39_s13 = sshll.u32 %s504_s12, 4  ;;  %s24_s16 = sshll.u32 %s638_s0, 4  ;;  %s40_s13 = int_to_ptr.vmem [resolvable:$true] %s39_s13  ;;  %s25_s16 = int_to_ptr.hbm [resolvable:$true] %s24_s16 }
   0x6   :  { %s505_s17 = smov 128   ;;  %s506_s18 = smov 8  }
   0x7   :  { %45 = dma.hbm_to_vmem [thread:$0]  %s38_s11, 512, %s40_s13, [#allocation6], %s505_s17, %s505_s17, %s506_s18  }
   0x8   :  { %s507_s19 = smov [#allocation2]   ;;  %s52_s1 = sshll.u32 %s641_s3, 4  ;;  %s53_s1 = int_to_ptr.hbm [resolvable:$true] %s52_s1 }
   0x9   :  { %s26_s20 = sshll.u32 %s507_s19, 4  ;;  %s67_s24 = sshll.u32 %s643_s5, 4  ;;  %s27_s20 = int_to_ptr.vmem [resolvable:$true] %s26_s20  ;;  %s68_s24 = int_to_ptr.hbm [resolvable:$true] %s67_s24 }
   0xa   :  { %32 = dma.hbm_to_vmem [thread:$0]  %s25_s16, 512, %s27_s20, [#allocation3], %s505_s17, %s505_s17, %s506_s18  }
   0xb   :  { %s508_s25 = smov [#allocation7]   ;;  %s509_s27 = smov [#allocation8]  }
   0xc   :  { %s54_s26 = sshll.u32 %s508_s25, 4  ;;  %s69_s3 = sshll.u32 %s509_s27, 4  ;;  %s55_s26 = int_to_ptr.vmem [resolvable:$true] %s54_s26  ;;  %s70_s3 = int_to_ptr.vmem [resolvable:$true] %s69_s3 }
   0xd   :  { %60 = dma.hbm_to_vmem [thread:$0]  %s53_s1, 512, %s55_s26, [#allocation6], %s505_s17, %s505_s17, %s506_s18  }
   0xe   :  { %75 = dma.hbm_to_vmem [thread:$0]  %s68_s24, 512, %s70_s3, [#allocation9], %s505_s17, %s505_s17, %s506_s18  }
   0xf   :  { %494 = dma.done.wait [#allocation3], 512  }
  0x10   :  { %495 = vsyncadd [#allocation3], 4294966784 }
  0x11   :  { %496 = dma.done.wait [#allocation6], 1024  }
  0x12   :  { %497 = vsyncadd [#allocation6], 4294966272 }
  0x13   :  { %498 = dma.done.wait [#allocation9], 512  }
  0x14   :  { %499 = vsyncadd [#allocation9], 4294966784  ;;  %v101_v0 = vld [vmem:[#allocation5 + $0x18] sm:$0xff]  ;;  %v100_v2 = vld [vmem:[#allocation5 + $0x10] sm:$0xff]  ;;  %vm106_vm0 = vcmask 261120   ;;  %s253_s13 = sshll.u32 %s646_s8, 4  ;;  %s254_s13 = int_to_ptr.hbm [resolvable:$true] %s253_s13 }
  0x15   :  { %v196_v1 = vld [vmem:[#allocation8 + $0x18] sm:$0xff]  ;;  %302 = vmatpush.msra.mxu3 %v101_v0  ;;  %v195_v3 = vld [vmem:[#allocation8 + $0x10] sm:$0xff]  ;;  %v99_v4 = vld [vmem:[#allocation5 + $0x8] sm:$0xff]  ;;  %131 = vmatpush.msra.mxu0 %v101_v0  ;;  %s511_s14 = smov [#allocation10]   ;;  %s240_s20 = sshll.u32 %s645_s7, 4  ;;  %s241_s20 = int_to_ptr.hbm [resolvable:$true] %s240_s20 }
  0x16   :  { %310 = vmatpush.msra.mxu2 %v196_v1  ;;  %v194_v5 = vld [vmem:[#allocation8 + $0x8] sm:$0xff]  ;;  %v155_v6 = vld [vmem:[#allocation7 + $0x18] sm:$0xff]  ;;  %v154_v7 = vld [vmem:[#allocation7 + $0x10] sm:$0xff]  ;;  %s238_s15 = sshll.u32 %s511_s14, 4  ;;  %s512_s21 = smov [#allocation13]   ;;  %s239_s15 = int_to_ptr.vmem [resolvable:$true] %s238_s15 }
  0x17   :  { %303 = vmatpush.msra.mxu3 %v100_v2  ;;  %306 = vmatpush.msra.mxu1 %v155_v6  ;;  %v98_v8 = vld [vmem:[#allocation5] sm:$0xff]  ;;  %v95_v10 = vld [vmem:[#allocation2 + $0x8] sm:$0xff]  ;;  %v96_v14 = vld [vmem:[#allocation2 + $0x10] sm:$0xff]  ;;  %s264_s22 = sshll.u32 %s512_s21, 4  ;;  %s266_s23 = sshll.u32 %s647_s9, 4  ;;  %s265_s22 = int_to_ptr.vmem [resolvable:$true] %s264_s22  ;;  %s267_s23 = int_to_ptr.hbm [resolvable:$true] %s266_s23 }
  0x18   :  { %311 = vmatpush.msra.mxu2 %v195_v3  ;;  %v193_v9 = vld [vmem:[#allocation8] sm:$0xff]  ;;  %132 = vmatpush.msra.mxu0 %v100_v2  ;;  %v153_v11 = vld [vmem:[#allocation7 + $0x8] sm:$0xff]  ;;  %v97_v15 = vld [vmem:[#allocation2 + $0x18] sm:$0xff] }
  0x19   :  { %304 = vmatpush.msra.mxu3 %v99_v4  ;;  %307 = vmatpush.msra.mxu1 %v154_v7  ;;  %v94_v12 = vld [vmem:[#allocation2] sm:$0xff] }
  0x1a   :  { %312 = vmatpush.msra.mxu2 %v194_v5  ;;  %133 = vmatpush.msra.mxu0 %v99_v4  ;;  %v152_v13 = vld [vmem:[#allocation7] sm:$0xff] }
  0x1b   :  { %305 = vmatpush.msra.mxu3 %v98_v8  ;;  %308 = vmatpush.msra.mxu1 %v153_v11  ;;  %v324_v16 = vld [vmem:[%s640_s2] ss:$0 sm:$0xff]  ;;  %s510_s2 = smov [#allocation11]  }
  0x1c   :  { %313 = vmatpush.msra.mxu2 %v193_v9  ;;  %291 = vmatmul.msk.f32.vlgmr.msra.gmra.mxu3 %vm106_vm0, %v95_v10  ;;  %v323_v17 = vld [vmem:[%s642_s4] ss:$0 sm:$0xff]  ;;  %s251_s4 = sshll.u32 %s510_s2, 4  ;;  %s252_s4 = int_to_ptr.vmem [resolvable:$true] %s251_s4 }
  0x1d   :  { %299 = vmatmul.msk.f32.vlgmr.msra.gmra.mxu2 %vm106_vm0, %v95_v10  ;;  %134 = vmatpush.msra.mxu0 %v98_v8  ;;  %v325_v20 = vld [vmem:[%s644_s6] ss:$0 sm:$0xff] }
  0x1e   :  { %290 = vmatmul.msk.f32.vlgmr.msra.gmra.mxu0 %vm106_vm0, %v94_v12  ;;  %309 = vmatpush.msra.mxu1 %v152_v13 }
  0x1f   :  { %172 = vmatpush.msrb.mxu0 %v155_v6  ;;  %295 = vmatmul.msk.f32.vlgmr.msra.gmra.mxu1 %vm106_vm0, %v95_v10 }
  0x21   :  { %173 = vmatpush.msrb.mxu0 %v154_v7 }
  0x23   :  { %174 = vmatpush.msrb.mxu0 %v153_v11 }
  0x24   :  { %292 = vmatmul.msk.f32.gmra.mxu3 %vm106_vm0, %v96_v14 }
  0x25   :  { %300 = vmatmul.msk.f32.gmra.mxu2 %vm106_vm0, %v96_v14  ;;  %175 = vmatpush.msrb.mxu0 %v152_v13 }
  0x26   :  { %294 = vmatmul.msk.f32.vlgmr.msrb.gmra.mxu0 %vm106_vm0, %v94_v12 }
  0x27   :  { %213 = vmatpush.msra.mxu0 %v196_v1  ;;  %296 = vmatmul.msk.f32.gmra.mxu1 %vm106_vm0, %v96_v14 }
  0x29   :  { %214 = vmatpush.msra.mxu0 %v195_v3 }
  0x2b   :  { %215 = vmatpush.msra.mxu0 %v194_v5 }
  0x2c   :  { %293 = vmatmul.msk.f32.gmra.mxu3 %vm106_vm0, %v97_v15 }
  0x2d   :  { %301 = vmatmul.msk.f32.gmra.mxu2 %vm106_vm0, %v97_v15  ;;  %216 = vmatpush.msra.mxu0 %v193_v9 }
  0x2e   :  { %298 = vmatmul.msk.f32.vlgmr.msra.gmra.mxu0 %vm106_vm0, %v94_v12 }
  0x2f   :  { %297 = vmatmul.msk.f32.gmra.mxu1 %vm106_vm0, %v97_v15 }
  0x9b   :  { %v136_v18 = vpop.f32.mrf.mxu0 }
  0x9c   :  { %v137_v19 = vadd.f32 %v324_v16, %v136_v18  ;;  %v180_v21 = vpop.f32.mrf.mxu1 }
  0x9d   :  { %v181_v22 = vadd.f32 %v323_v17, %v180_v21 }
  0x9e   :  { %148 = vst.msk [vmem:[#allocation10] sm:$0xff] %vm106_vm0, %v137_v19 }
  0x9f   :  { %v139_v23 = vpop.f32.mrf.mxu3  ;;  %190 = vst.msk [vmem:[#allocation11 + $0x8] sm:$0xff] %vm106_vm0, %v181_v22 }
  0xa0   :  { %v221_v24 = vpop.f32.mrf.mxu2  ;;  %v140_v25 = vadd.f32 %v324_v16, %v139_v23 }
  0xa1   :  { %v222_v26 = vadd.f32 %v325_v20, %v221_v24 }
  0xa2   :  { %149 = vst.msk [vmem:[#allocation10 + $0x8] sm:$0xff] %vm106_vm0, %v140_v25 }
  0xa3   :  { %231 = vst.msk [vmem:[#allocation13 + $0x8] sm:$0xff] %vm106_vm0, %v222_v26  ;;  %v177_v27 = vpop.f32.mrf.mxu0 }
  0xa4   :  { %v178_v28 = vadd.f32 %v323_v17, %v177_v27  ;;  %v183_v29 = vpop.f32.mrf.mxu1 }
  0xa5   :  { %v184_v30 = vadd.f32 %v323_v17, %v183_v29 }
  0xa6   :  { %189 = vst.msk [vmem:[#allocation11] sm:$0xff] %vm106_vm0, %v178_v28 }
  0xa7   :  { %v142_v31 = vpop.f32.mrf.mxu3  ;;  %191 = vst.msk [vmem:[#allocation11 + $0x10] sm:$0xff] %vm106_vm0, %v184_v30 }
  0xa8   :  { %v224_v32 = vpop.f32.mrf.mxu2  ;;  %v143_v33 = vadd.f32 %v324_v16, %v142_v31 }
  0xa9   :  { %v225_v34 = vadd.f32 %v325_v20, %v224_v32 }
  0xaa   :  { %150 = vst.msk [vmem:[#allocation10 + $0x10] sm:$0xff] %vm106_vm0, %v143_v33 }
  0xab   :  { %232 = vst.msk [vmem:[#allocation13 + $0x10] sm:$0xff] %vm106_vm0, %v225_v34  ;;  %v218_v35 = vpop.f32.mrf.mxu0 }
  0xac   :  { %v219_v36 = vadd.f32 %v325_v20, %v218_v35  ;;  %v186_v37 = vpop.f32.mrf.mxu1 }
  0xad   :  { %v187_v38 = vadd.f32 %v323_v17, %v186_v37 }
  0xae   :  { %230 = vst.msk [vmem:[#allocation13] sm:$0xff] %vm106_vm0, %v219_v36 }
  0xaf   :  { %v145_v39 = vpop.f32.mrf.mxu3  ;;  %192 = vst.msk [vmem:[#allocation11 + $0x18] sm:$0xff] %vm106_vm0, %v187_v38 }
  0xb0   :  { %v227_v40 = vpop.f32.mrf.mxu2  ;;  %v146_v41 = vadd.f32 %v324_v16, %v145_v39  ;;  %259 = dma.vmem_to_hbm [thread:$0]  %s252_s4, 512, %s254_s13, [#allocation12], %s505_s17, %s505_s17, %s506_s18  }
  0xb1   :  { %v228_v42 = vadd.f32 %v325_v20, %v227_v40 }
  0xb2   :  { %151 = vst.msk [vmem:[#allocation10 + $0x18] sm:$0xff] %vm106_vm0, %v146_v41 }
  0xb3   :  { %233 = vst.msk [vmem:[#allocation13 + $0x18] sm:$0xff] %vm106_vm0, %v228_v42  ;;  %246 = dma.vmem_to_hbm [thread:$0]  %s239_s15, 512, %s241_s20, [#allocation4], %s505_s17, %s505_s17, %s506_s18  }
  0xb4   :  { %272 = dma.vmem_to_hbm [thread:$0]  %s265_s22, 512, %s267_s23, [#allocation12], %s505_s17, %s505_s17, %s506_s18  }
  0xb5   :  { %500 = dma.done.wait [#allocation4], 512  }
  0xb6   :  { %501 = vsyncadd [#allocation4], 4294966784 }
  0xb7   :  { %502 = dma.done.wait [#allocation12], 1024  }
  0xb8   :  { %503 = vsyncadd [#allocation12], 4294966272 }
  0xb9   :  { %285 = vsyncpa [#allocation3], 1 }
  0xba   :  { %286 = vsyncpa [#allocation6], 1 }
  0xbb   :  { %287 = vsyncpa [#allocation9], 1 }
  0xbc   :  { %288 = vsyncpa [#allocation4], 1 }
  0xbd   :  { %289 = vsyncpa [#allocation12], 1 }

</bundles_post_ra>
